<compile_context>
chip_gen: v7x
topology: tpu7x:2x2x1
jax: 0.10.0
libtpu: 0.0.40
codegen_flags: <defaults>
</compile_context>

<pallas_src>
import jax
import jax.numpy as jnp
from jax.experimental import pallas as pl
from jax.experimental.pallas import tpu as pltpu


def _round_up(x: int, m: int) -> int:
    return ((x + m - 1) // m) * m


# Conservative VMEM budget for tile sizing: fits v5e's 16 MiB scoped default
# (and trivially v6e/v7x) with headroom, even if single-buffering of the
# constant blocks is unavailable and they end up double-buffered.
_VMEM_BUDGET_BYTES = 12 * (1 << 20)


def timestep_embedding_kernel(x_ref, w1_ref, w2t_ref, b2_ref, o_ref):
    # lin1 with in_features=1 is a broadcasted scale: (TB,1) * (1,E_pad) -> (TB,E_pad).
    # NOTE: jnp.sin lowers to a VPU polynomial (range reduction + poly), not an
    # EUP op — it occupies VALU slots, but this kernel is overhead/DMA-bound so
    # that is not the binding resource at these shapes.
    h = jnp.sin(x_ref[...] * w1_ref[...]).astype(w2t_ref.dtype)
    # lin2: h @ W2^T + b2 on the MXU with f32 accumulation; bias add in f32.
    o_ref[...] = (
        jnp.dot(h, w2t_ref[...], preferred_element_type=jnp.float32)
        + b2_ref[...]
    ).astype(o_ref.dtype)


def prepare_timestep_embedding_params(w1, w2, b2, *, matmul_dtype=jnp.bfloat16):
    """One-time weight prep (transpose / zero-pad / cast). Cache the result.

    w1: (E, 1) lin1.weight; w2: (E, E) lin2.weight; b2: (E,) lin2.bias.
    Returns (w1_p, w2t_p, b2_p, E) with E_pad = round_up(E, 128) lane padding.
    """
    E = w1.shape[0]
    E_pad = _round_up(E, 128)
    w1_p = (
        jnp.zeros((1, E_pad), jnp.float32)
        .at[0, :E].set(w1.reshape(E).astype(jnp.float32))
    )
    w2t_p = (
        jnp.zeros((E_pad, E_pad), jnp.float32)
        .at[:E, :E].set(w2.T.astype(jnp.float32))
    ).astype(matmul_dtype)
    b2_p = jnp.zeros((1, E_pad), jnp.float32).at[0, :E].set(b2.astype(jnp.float32))
    return w1_p, w2t_p, b2_p, E


def _choose_tiling(B: int, E_pad: int, tb: int, out_itemsize: int):
    """Pick (TB, B_pad) minimizing padding waste, honoring VMEM + v7x sharding."""
    B_min = _round_up(max(B, 1), 8)

    # Cap TB so the pipelined buffers fit a conservative VMEM budget.
    # Dominant per-row cost: double-buffered out tile + double-buffered x tile.
    per_row = 2 * E_pad * out_itemsize + 2 * 1 * 4
    # Constant blocks: count w2^T twice as a safety margin (in case Buffered(1)
    # is unavailable and it gets double-buffered), plus w1 + b2.
    const_bytes = 2 * E_pad * E_pad * 2 + 2 * (2 * E_pad * 4)
    tb_vmem = max(8, (((_VMEM_BUDGET_BYTES - const_bytes) // per_row) // 8) * 8)
    tb_eff = max(8, min(tb, tb_vmem))

    # Grid steps: at least 2 when there is enough work, so the "parallel" B axis
    # can shard across the 2 TensorCores on v7x.
    steps = -(-B_min // tb_eff)
    if B_min >= 16:
        steps = max(steps, 2)
    TB = _round_up(-(-B_min // steps), 8)
    steps = -(-B_min // TB)
    B_pad = steps * TB
    return TB, B_pad


def _resident_spec(shape):
    """BlockSpec for a constant (grid-invariant) block; single-buffered."""
    try:
        return pl.BlockSpec(shape, lambda i: (0, 0), pipeline_mode=pl.Buffered(1))
    except TypeError:  # older jax without pipeline_mode kwarg — fall back
        return pl.BlockSpec(shape, lambda i: (0, 0))


def timestep_embedding_apply(x, w1_p, w2t_p, b2_p, E, *, tb=1024,
                             out_dtype=jnp.float32):
    """Apply the embedding with pre-prepared (padded) params."""
    x2 = x.reshape(-1, 1).astype(jnp.float32)            # (B, 1)
    B = x2.shape[0]
    E_pad = w1_p.shape[1]

    out_itemsize = jnp.dtype(out_dtype).itemsize
    TB, B_pad = _choose_tiling(B, E_pad, tb, out_itemsize)

    x_p = x2 if B_pad == B else jnp.zeros((B_pad, 1), jnp.float32).at[:B, :].set(x2)

    grid = (B_pad // TB,)
    out = pl.pallas_call(
        timestep_embedding_kernel,
        out_shape=jax.ShapeDtypeStruct((B_pad, E_pad), out_dtype),
        grid_spec=pl.GridSpec(
            grid=grid,
            in_specs=[
                pl.BlockSpec((TB, 1), lambda i: (i, 0)),   # x tile, pipelined
                _resident_spec((1, E_pad)),                # w1, VMEM-resident
                _resident_spec((E_pad, E_pad)),            # w2^T, VMEM-resident
                _resident_spec((1, E_pad)),                # b2, VMEM-resident
            ],
            out_specs=pl.BlockSpec((TB, E_pad), lambda i: (i, 0)),
        ),
        compiler_params=pltpu.CompilerParams(
            dimension_semantics=("parallel",)   # shard B across TCs on v7x
        ),
    )(x_p, w1_p, w2t_p, b2_p)

    # Un-pad only when padding was actually added (skip the extra XLA copy
    # when B == B_pad and E == E_pad, e.g. real UNet E = 512 / 1280).
    if B_pad != B or E_pad != E:
        out = out[:B, :E]
    return out.reshape(B, E, 1, 1)


def timestep_embedding(x, w1, w2, b2, *, tb=1024, matmul_dtype=jnp.bfloat16,
                       out_dtype=jnp.float32):
    """Convenience one-shot wrapper. For repeated calls, prepare params once."""
    w1_p, w2t_p, b2_p, E = prepare_timestep_embedding_params(
        w1, w2, b2, matmul_dtype=matmul_dtype)
    return timestep_embedding_apply(x, w1_p, w2t_p, b2_p, E, tb=tb,
                                    out_dtype=out_dtype)


def _reference(x, w1, w2, b2):
    E = w1.shape[0]
    h = jnp.sin(x.reshape(-1, 1) @ w1.T)
    return (h @ w2.T + b2).reshape(-1, E, 1, 1)


if __name__ == "__main__":
    E = 32  # emb_dim

    key = jax.random.PRNGKey(0)
    k_x, k_w1, k_w2, k_b2, k_x2 = jax.random.split(key, 5)

    # Deterministic synthetic parameters (shapes from nn.Linear init).
    w1 = jax.random.normal(k_w1, (E, 1), dtype=jnp.float32) * 0.5   # lin1.weight
    w2 = jax.random.normal(k_w2, (E, E), dtype=jnp.float32) * (1.0 / jnp.sqrt(E))
    b2 = jax.random.normal(k_b2, (E,), dtype=jnp.float32) * 0.1     # lin2.bias

    # Prepare padded/casted weights ONCE and reuse across calls.
    w1_p, w2t_p, b2_p, E_out = prepare_timestep_embedding_params(w1, w2, b2)

    # --- small batch (single grid step) ---
    B = 8
    x = jax.random.uniform(k_x, (B,), dtype=jnp.float32) * 10.0     # timesteps
    out = jax.block_until_ready(
        timestep_embedding_apply(x, w1_p, w2t_p, b2_p, E_out))
    ref = _reference(x, w1, w2, b2)
    assert out.shape == (B, E, 1, 1)
    # bf16 MXU path -> loosened tolerance vs the f32 reference.
    assert jnp.allclose(out, ref, atol=2e-2, rtol=2e-2)

    # --- larger, non-multiple-of-8 batch (multi-step grid, minimal tail padding) ---
    B2 = 300
    x2 = jax.random.uniform(k_x2, (B2,), dtype=jnp.float32) * 10.0
    out2 = jax.block_until_ready(
        timestep_embedding_apply(x2, w1_p, w2t_p, b2_p, E_out))
    ref2 = _reference(x2, w1, w2, b2)
    assert out2.shape == (B2, E, 1, 1)
    assert jnp.allclose(out2, ref2, atol=2e-2, rtol=2e-2)

    # One-shot convenience path still works.
    out3 = jax.block_until_ready(timestep_embedding(x, w1, w2, b2))
    assert jnp.allclose(out3, ref, atol=2e-2, rtol=2e-2)

    print("KERNEL_OK")
</pallas_src>

<mosaic_0001>
module attributes {stable_mosaic.version = 11 : i64} {
  func.func @timestep_embedding_kernel(%arg0: i32, %arg1: memref<8x1xf32, #tpu.memory_space<vmem>>, %arg2: memref<1x128xf32, #tpu.memory_space<vmem>>, %arg3: memref<128x128xbf16, #tpu.memory_space<vmem>>, %arg4: memref<1x128xf32, #tpu.memory_space<vmem>>, %arg5: memref<8x128xf32, #tpu.memory_space<vmem>>) attributes {dimension_semantics = [#tpu.dimension_semantics<parallel>], iteration_bounds = array<i64: 1>, scalar_prefetch = 0 : i64, scratch_operands = 0 : i64, tpu.core_type = #tpu.core_type<tc>, window_params = [{transform_indices = @transform_0, window_bounds = array<i64: 8, 1>}, {pipeline_mode = #tpu.pipeline_mode<synchronous>, transform_indices = @transform_1, window_bounds = array<i64: 1, 128>}, {pipeline_mode = #tpu.pipeline_mode<synchronous>, transform_indices = @transform_2, window_bounds = array<i64: 128, 128>}, {pipeline_mode = #tpu.pipeline_mode<synchronous>, transform_indices = @transform_3, window_bounds = array<i64: 1, 128>}, {transform_indices = @transform_4, window_bounds = array<i64: 8, 128>}]} {
    %c0 = arith.constant 0 : index
    %c0_0 = arith.constant 0 : index
    %0 = vector.load %arg1[%c0, %c0_0] : memref<8x1xf32, #tpu.memory_space<vmem>>, vector<8x1xf32>
    %c0_1 = arith.constant 0 : index
    %c0_2 = arith.constant 0 : index
    %1 = vector.load %arg2[%c0_1, %c0_2] : memref<1x128xf32, #tpu.memory_space<vmem>>, vector<1x128xf32>
    %2 = vector.broadcast %0 : vector<8x1xf32> to vector<8x128xf32>
    %3 = vector.broadcast %1 : vector<1x128xf32> to vector<8x128xf32>
    %4 = arith.mulf %2, %3 : vector<8x128xf32>
    %5 = math.sin %4 : vector<8x128xf32>
    %6 = arith.truncf %5 : vector<8x128xf32> to vector<8x128xbf16>
    %c0_3 = arith.constant 0 : index
    %c0_4 = arith.constant 0 : index
    %7 = vector.load %arg3[%c0_3, %c0_4] : memref<128x128xbf16, #tpu.memory_space<vmem>>, vector<128x128xbf16>
    %cst = arith.constant dense<0.000000e+00> : vector<8x128xf32>
    %8 = tpu.matmul %6, %7, %cst {dimension_numbers = #tpu.dot_dimension_numbers<[1], [0], [0], [1], [0, 0, 1, 1], [], []>} : vector<8x128xbf16>, vector<128x128xbf16>, vector<8x128xf32> -> vector<8x128xf32>
    %c0_5 = arith.constant 0 : index
    %c0_6 = arith.constant 0 : index
    %9 = vector.load %arg4[%c0_5, %c0_6] : memref<1x128xf32, #tpu.memory_space<vmem>>, vector<1x128xf32>
    %10 = vector.broadcast %9 : vector<1x128xf32> to vector<8x128xf32>
    %11 = arith.addf %8, %10 : vector<8x128xf32>
    %c0_7 = arith.constant 0 : index
    %c0_8 = arith.constant 0 : index
    %12 = vector.load %arg5[%c0_7, %c0_8] : memref<8x128xf32, #tpu.memory_space<vmem>>, vector<8x128xf32>
    tpu.vector_store %arg5[%c0_7, %c0_8], %11 {strides = array<i32>} : memref<8x128xf32, #tpu.memory_space<vmem>>, vector<8x128xf32>,
    return
  }
  func.func @transform_0(%arg0: i32) -> (i32, i32) {
    %c0_i32 = arith.constant 0 : i32
    %c0_i32_0 = arith.constant 0 : i32
    return %arg0, %c0_i32 : i32, i32
  }
  func.func @transform_1(%arg0: i32) -> (i32, i32) {
    %c0_i32 = arith.constant 0 : i32
    %c0_i32_0 = arith.constant 0 : i32
    %c0_i32_1 = arith.constant 0 : i32
    return %c0_i32, %c0_i32_0 : i32, i32
  }
  func.func @transform_2(%arg0: i32) -> (i32, i32) {
    %c0_i32 = arith.constant 0 : i32
    %c0_i32_0 = arith.constant 0 : i32
    %c0_i32_1 = arith.constant 0 : i32
    return %c0_i32, %c0_i32_0 : i32, i32
  }
  func.func @transform_3(%arg0: i32) -> (i32, i32) {
    %c0_i32 = arith.constant 0 : i32
    %c0_i32_0 = arith.constant 0 : i32
    %c0_i32_1 = arith.constant 0 : i32
    return %c0_i32, %c0_i32_0 : i32, i32
  }
  func.func @transform_4(%arg0: i32) -> (i32, i32) {
    %c0_i32 = arith.constant 0 : i32
    %c0_i32_0 = arith.constant 0 : i32
    return %arg0, %c0_i32 : i32, i32
  }
}

</mosaic_0001>

<bundles_post_ra>
// kernel: tpu_custom_call.1
= control target key start
LH: loop header
LB: loop body
LE: loop exit
PB: predicated region body
PF: predicated region fallthrough
CT: control target
= control target key end

     0   :  { %9 = vsyncpa [#allocation3], 0  ;;  %s492_s0 = inlined_call_operand.vmem [shape: f32[8,1], index: 0, kind: input, shape index: {}]   ;;  %s493_s1 = inlined_call_operand.vmem [shape: f32[1,128], index: 1, kind: input, shape index: {}]   ;;  %s494_s2 = inlined_call_operand.hbm [shape: bf16[128,128], index: 2, kind: input, shape index: {}]   ;;  %s495_s3 = inlined_call_operand.vmem [shape: f32[1,128], index: 3, kind: input, shape index: {}]   ;;  %s496_s4 = inlined_call_operand.hbm [shape: f32[8,128], index: 4, kind: output, shape index: {}]  }
   0x1   :  { %10 = vsyncpa [#allocation4], 0  ;;  %s400_s15 = smov [#allocation2]   ;;  %s352_s19 = scalar_lea.hbm %s494_s2, 1024 }
   0x2   :  { %s20_s16 = sshll.u32 %s400_s15, 4  ;;  %p353_p0 = scmp.ne.s32.totalorder %s494_s2, %s352_s19  ;;  %s21_s16 = int_to_ptr.vmem [resolvable:$true] %s20_s16 }
   0x3   :  { %p356_p1 = scmp.lt.u32.totalorder %s352_s19, %s494_s2 }
   0x5   :  { %p358_p2 = pnand %p356_p1, %p353_p0 }
   0x7   :  { %361 = shalt.err (!%p358_p2)
}
   0x8   :  { %s362_s24 = scalar_lea.vmem %s21_s16, 1024  ;;  %p367_p4 = scmp.lt.s32.totalorder %s21_s16, %s21_s16 }
   0x9   :  { %p363_p3 = scmp.ne.s32.totalorder %s21_s16, %s362_s24  ;;  %p368_p5 = scmp.lt.s32.totalorder %s362_s24, %s362_s24 }
   0xb   :  { %p369_p6 = por %p368_p5, %p367_p4 }
   0xd   :  { %p370_p7 = pnand %p369_p6, %p363_p3 }
   0xf   :  { %373 = shalt.err (!%p370_p7)
}
  0x10   :  { %s401_s25 = smov 64   ;;  %s402_s26 = smov 4  }
  0x11   :  { %26 = dma.hbm_to_vmem [thread:$0]  %s494_s2, 1024, %s21_s16, [#allocation3], %s401_s25, %s401_s25, %s402_s26  }
  0x12   :  { %396 = dma.done.wait [#allocation3], 1024  }
  0x13   :  { %397 = vsyncadd [#allocation3], 4294966272  ;;  %v403_v0 = vmov 0   ;;  %v33_v1 = vld [vmem:[%s492_s0] sm:$0xff]  ;;  %v340_v2 = vld [vmem:[#allocation2] sm:$0xff]   ;;  %v404_v3 = vmov 0.0  }
  0x14   :  { %339 = vset.pattern.permute.xlu0 %v403_v0  ;;  %302 = vmatprep.subr.bf16.mxu0 %v404_v3  ;;  %v341_v4 = vld [vmem:[#allocation2 + $0x8] sm:$0xff]   ;;  %v342_v5 = vld [vmem:[#allocation2 + $0x10] sm:$0xff]   ;;  %v343_v6 = vld [vmem:[#allocation2 + $0x18] sm:$0xff]   ;;  %vm405_vm0 = vmmov 0   ;;  %v406_v24 = vmov 683565275  }
  0x15   :  { %37 = vperm.xlu0 %339, %v33_v1   ;;  %303 = vmatpush3.bf16.msra.mxu0 %v340_v2  ;;  %v344_v7 = vld [vmem:[#allocation2 + $0x20] sm:$0xff]   ;;  %v345_v8 = vld [vmem:[#allocation2 + $0x28] sm:$0xff]   ;;  %v346_v9 = vld [vmem:[#allocation2 + $0x30] sm:$0xff]   ;;  %v407_v26 = vmov 2475754826   ;;  %s412_s6 = smov [#allocation5]  }
  0x16   :  { %304 = vmatprep.subr.bf16.mxu0 %v404_v3  ;;  %318 = vmatprep.mubr.msk.bf16.mxu0 %vm405_vm0, %v404_v3  ;;  %v347_v10 = vld [vmem:[#allocation2 + $0x38] sm:$0xff]   ;;  %v279_v11 = vld [vmem:[%s493_s1] ss:$0 sm:$0xff]  ;;  %v408_v29 = vmov 2131351028   ;;  %s270_s7 = sshll.u32 %s412_s6, 4  ;;  %s271_s7 = int_to_ptr.vmem [resolvable:$true] %s270_s7 }
  0x17   :  { %v409_v32 = vmov 2102212464   ;;  %v410_v35 = vmov 920167782   ;;  %v411_v38 = vmov 1326507024   ;;  %p379_p9 = scmp.lt.s32.totalorder %s271_s7, %s271_s7 }
  0x18   :  { %s374_s8 = scalar_lea.vmem %s271_s7, 128 }
  0x19   :  { %305 = vmatpush3.bf16.msra.mxu0 %v341_v4  ;;  %p375_p8 = scmp.ne.s32.totalorder %s271_s7, %s374_s8  ;;  %p380_p10 = scmp.lt.s32.totalorder %s374_s8, %s374_s8 }
  0x1a   :  { %306 = vmatprep.subr.bf16.mxu0 %v404_v3 }
  0x1b   :  { %p381_p11 = por %p380_p10, %p379_p9 }
  0x1d   :  { %307 = vmatpush3.bf16.msra.mxu0 %v342_v5  ;;  %p382_p12 = pnand %p381_p11, %p375_p8 }
  0x1e   :  { %308 = vmatprep.subr.bf16.mxu0 %v404_v3 }
  0x21   :  { %309 = vmatpush3.bf16.msra.mxu0 %v343_v6 }
  0x22   :  { %310 = vmatprep.subr.bf16.mxu0 %v404_v3 }
  0x25   :  { %311 = vmatpush3.bf16.msra.mxu0 %v344_v7 }
  0x26   :  { %312 = vmatprep.subr.bf16.mxu0 %v404_v3 }
  0x29   :  { %313 = vmatpush3.bf16.msra.mxu0 %v345_v8 }
  0x2a   :  { %314 = vmatprep.subr.bf16.mxu0 %v404_v3 }
  0x2d   :  { %315 = vmatpush3.bf16.msra.mxu0 %v346_v9 }
  0x2e   :  { %316 = vmatprep.subr.bf16.mxu0 %v404_v3 }
  0x31   :  { %317 = vmatpush3.bf16.msra.mxu0 %v347_v10 }
  0x94   :  { %v38_v12 = vpop.permute.xlu0 %37 }
  0x95   :  { %v456_v13 = vmul.f32 %v279_v11, %v38_v12 }
  0x97   :  { %v50_v14 = vand.u32 2139095040, %v456_v13  ;;  %v47_v18 = vand.u32 2147483647, %v456_v13  ;;  %vm49_vm8 = vcmp.lt.s32.totalorder %v456_v13, 0  ;;  %vm139_vm13 = vweird.f32 %v456_v13 }
  0x99   :  { %v51_v15 = vshrl.u32 %v50_v14, 23  ;;  %v54_v21 = vand.u32 8388607, %v47_v18  ;;  %vm48_vm9 = vcmp.le.f32.partialorder %v47_v18, 0.7853982 }
  0x9b   :  { %v280_v16 = vadd.s32 4294967169, %v51_v15  ;;  %v55_v40 = vor.u32 8388608, %v54_v21 }
  0x9d   :  { %v57_v17 = vadd.s32 1, %v280_v16  ;;  %v95_v54 = vshll.u32 %v55_v40, 8 }
  0x9f   :  { %vm58_vm1 = vcmp.gt.s32.totalorder %v57_v17, 0 }
  0xa0   :  { %v59_v19 = vsel %vm58_vm1, %v57_v17, 0 }
  0xa1   :  { %v61_v20 = vand.u32 31, %v59_v19  ;;  %v60_v23 = vshrl.u32 %v59_v19, 5 }
  0xa3   :  { %v62_v22 = vsub.s32 32, %v61_v20  ;;  %v64_v25 = vshll.u32 %v406_v24, %v61_v20  ;;  %v67_v27 = vshll.u32 %v407_v26, %v61_v20  ;;  %v70_v31 = vshll.u32 %v408_v29, %v61_v20 }
  0xa4   :  { %v73_v34 = vshll.u32 %v409_v32, %v61_v20  ;;  %v76_v37 = vshll.u32 %v410_v35, %v61_v20  ;;  %vm79_vm2 = vcmp.lt.s32.totalorder %v60_v23, 1  ;;  %vm82_vm3 = vcmp.lt.s32.totalorder %v60_v23, 4 }
  0xa5   :  { %v65_v28 = vshrl.u32 %v407_v26, %v62_v22  ;;  %v68_v30 = vshrl.u32 %v408_v29, %v62_v22  ;;  %v71_v33 = vshrl.u32 %v409_v32, %v62_v22  ;;  %v74_v36 = vshrl.u32 %v410_v35, %v62_v22 }
  0xa6   :  { %v77_v39 = vshrl.u32 %v411_v38, %v62_v22  ;;  %v63_v49 = vshrl.u32 %v406_v24, %v62_v22  ;;  %vm81_vm4 = vcmp.lt.s32.totalorder %v60_v23, 3  ;;  %vm80_vm5 = vcmp.lt.s32.totalorder %v60_v23, 2 }
  0xa7   :  { %v66_v41 = vor.u32 %v65_v28, %v64_v25  ;;  %v69_v42 = vor.u32 %v68_v30, %v67_v27  ;;  %v72_v43 = vor.u32 %v71_v33, %v70_v31  ;;  %v75_v44 = vor.u32 %v74_v36, %v73_v34 }
  0xa8   :  { %v78_v45 = vor.u32 %v77_v39, %v76_v37 }
  0xa9   :  { %v84_v46 = vsel %vm82_vm3, %v72_v43, 2102212464  ;;  %v87_v47 = vsel %vm79_vm2, %v66_v41, %v69_v42  ;;  %v91_v48 = vsel %vm79_vm2, %v69_v42, %v72_v43  ;;  %v88_v50 = vsel %vm82_vm3, %v75_v44, 920167782 }
  0xaa   :  { %v92_v51 = vsel %vm82_vm3, %v78_v45, 1326507024  ;;  %v89_v52 = vsel %vm81_vm4, %v72_v43, %v88_v50  ;;  %v83_v55 = vsel %vm79_vm2, %v63_v49, %v66_v41  ;;  %v85_v56 = vsel %vm81_vm4, %v69_v42, %v84_v46  ;;  %v284_v43 = vld [vmem:[%s495_s3] ss:$0 sm:$0xff] }
  0xab   :  { %v93_v53 = vsel %vm81_vm4, %v75_v44, %v92_v51  ;;  %v90_v57 = vsel %vm80_vm5, %v87_v47, %v89_v52  ;;  %v86_v63 = vsel %vm80_vm5, %v83_v55, %v85_v56 }
  0xac   :  { %v94_v58 = vsel %vm80_vm5, %v91_v48, %v93_v53  ;;  %v465_v61 = vmul.u32.u64.low %v95_v54, %v90_v57  ;;  %v466_v62 = vmul.u32.u64.high %v95_v54, %v90_v57, %v465_v61  ;;  %v102_v1 = vmul.u32 %v95_v54, %v86_v63 }
  0xad   :  { %v462_v59 = vmul.u32.u64.low %v95_v54, %v94_v58  ;;  %v463_v60 = vmul.u32.u64.high %v95_v54, %v94_v58, %v462_v59 }
  0xae   :  { %v105_v0 = vadd.s32 1, %v466_v62 }
  0xaf   :  { %vm104_vm6 = vc.u32 %v463_v60, %v465_v61  ;;  %v103_v14 = vadd.s32 %v465_v61, %v463_v60 }
  0xb0   :  { %v106_v2 = vsel %vm104_vm6, %v105_v0, %v466_v62 }
  0xb1   :  { %v107_v3 = vadd.s32 %v106_v2, %v102_v1 }
  0xb3   :  { %v108_v4 = vadd.s32 536870912, %v107_v3 }
  0xb5   :  { %v109_v5 = vshrl.u32 %v108_v4, 30 }
  0xb7   :  { %v110_v6 = vshll.u32 %v109_v5, 30  ;;  %v133_v27 = vsub.s32 4, %v109_v5 }
  0xb9   :  { %v111_v7 = vsub.s32 %v107_v3, %v110_v6  ;;  %v134_v30 = vsel %vm49_vm8, %v133_v27, %v109_v5 }
  0xba   :  { %v136_v32 = vsel %vm48_vm9, 0, %v134_v30 }
  0xbb   :  { %v113_v8 = vsub.s32 0, %v111_v7  ;;  %v140_v33 = vadd.s32 3, %v136_v32 }
  0xbd   :  { %v281_v9 = vmin.u32 %v113_v8, %v111_v7  ;;  %v141_v34 = vand.u32 3, %v140_v33 }
  0xbf   :  { %v115_v10 = vclz %v281_v9  ;;  %vm146_vm10 = vcmp.eq.s32.totalorder %v141_v34, 2  ;;  %vm143_vm11 = vcmp.eq.s32.totalorder %v141_v34, 0  ;;  %vm142_vm12 = vcmp.lt.s32.totalorder %v141_v34, 2 }
  0xc1   :  { %v282_v11 = vadd.s32 4294967294, %v115_v10 }
  0xc3   :  { %vm283_vm7 = vcmp.lt.s32.totalorder %v282_v11, 0 }
  0xc4   :  { %v118_v12 = vsel %vm283_vm7, 0, %v282_v11 }
  0xc5   :  { %v119_v15 = vsub.s32 32, %v118_v12  ;;  %v123_v16 = vsub.s32 4294967266, %v118_v12  ;;  %v120_v17 = vshll.u32 %v111_v7, %v118_v12 }
  0xc7   :  { %v121_v19 = vshrl.u32 %v103_v14, %v119_v15  ;;  %v124_v20 = vadd.s32 127, %v123_v16 }
  0xc9   :  { %v122_v21 = vor.u32 %v121_v19, %v120_v17  ;;  %v125_v22 = vshll.u32 %v124_v20, 23 }
  0xcb   :  { %v126_v23 = vor.u32 4788187, %v125_v22  ;;  %v129_v25 = vcvt.s32.f32 %v122_v21 }
  0xcd   :  { %v127_v24 = vand.u32 2147483647, %v126_v23 }
  0xcf   :  { %v130_v26 = vmul.f32 %v129_v25, %v127_v24 }
  0xd1   :  { %v131_v28 = vxor.u32 2147483648, %v130_v26 }
  0xd3   :  { %v132_v29 = vsel %vm49_vm8, %v131_v28, %v130_v26 }
  0xd4   :  { %v135_v31 = vsel %vm48_vm9, %v456_v13, %v132_v29 }
  0xd5   :  { %348 = vcosq.f32 %v135_v31 }
  0xd6   :  { %350 = vsinq.f32 %v135_v31 }
  0xdf   :  { %v349_v35 = vpop.eup %348 }
  0xe0   :  { %v351_v36 = vpop.eup %350  ;;  %v147_v37 = vxor.u32 2147483648, %v349_v35 }
  0xe1   :  { %v144_v38 = vxor.u32 2147483648, %v351_v36 }
  0xe2   :  { %v148_v39 = vsel %vm146_vm10, %v147_v37, %v351_v36 }
  0xe3   :  { %v145_v40 = vsel %vm143_vm11, %v349_v35, %v144_v38 }
  0xe4   :  { %v149_v18 = vsel %vm142_vm12, %v145_v40, %v148_v39 }
  0xe5   :  { %v150_v41 = vsel %vm139_vm13, nan, %v149_v18 }
  0xe6   :  { %v151_v42 = vpack.c.bf16 %v150_v41, %v150_v41 }
  0xe8   :  { %319 = vmatmul.mubr.bf16.vlgmr.msra.gmra.mrb[0].mxu0 %v151_v42 }
 0x1bb   :  { %v257_v44 = vpop.f32.mrb[0].mxu0 }
 0x1bc   :  { %v258_v45 = vadd.f32 %v284_v43, %v257_v44  ;;  %v320_v46 = vpop.f32.mrb[1].mxu0 }
 0x1bd   :  { %v260_v47 = vpop.f32.mrb[2].mxu0 }
 0x1be   :  { %263 = vst [vmem:[#allocation5] sm:$0xff] %v258_v45  ;;  %v321_v48 = vpop.f32.mrb[3].mxu0 }
 0x1bf   :  { %385 = shalt.err (!%p382_p12)
}
 0x1c0   :  { %s386_s3 = scalar_lea.hbm %s496_s4, 128 }
 0x1c1   :  { %p387_p13 = scmp.ne.s32.totalorder %s496_s4, %s386_s3  ;;  %p390_p0 = scmp.lt.u32.totalorder %s386_s3, %s496_s4 }
 0x1c3   :  { %p392_p1 = pnand %p390_p0, %p387_p13 }
 0x1c5   :  { %395 = shalt.err (!%p392_p1)
}
 0x1c6   :  { %273 = dma.vmem_to_hbm [thread:$0]  %s271_s7, 128, %s496_s4, [#allocation4]  }
 0x1c7   :  { %398 = dma.done.wait [#allocation4], 128  }
 0x1c8   :  { %399 = vsyncadd [#allocation4], 4294967168 }
 0x1c9   :  { %277 = vsyncpa [#allocation3], 1 }
 0x1ca   :  { %278 = vsyncpa [#allocation4], 1 }

</bundles_post_ra>
